<compile_context>
chip_gen: v7x
topology: tpu7x:2x2x1
jax: 0.10.0
libtpu: 0.0.40
codegen_flags: <defaults>
</compile_context>

<pallas_src>
import functools
import math

import jax
import jax.numpy as jnp
from jax import lax
from jax.experimental import pallas as pl
from jax.experimental.pallas import tpu as pltpu


def _round_up(a, b):
    return (a + b - 1) // b * b


# ------------------------- pltpu.roll sign probe -----------------------------

@functools.lru_cache(maxsize=None)
def _roll_sign():
    """Lock the sublane-rotation sign convention of pltpu.roll.

    The kernel needs out[i] = prod[i - shift]. pltpu.roll is documented to
    match jnp.roll; probe it once on-device so a backend convention change
    cannot silently misalign the neighbour terms.
    """
    def k(x_ref, o_ref):
        o_ref[...] = pltpu.roll(x_ref[...], shift=1, axis=0)

    x = jnp.arange(8 * 128, dtype=jnp.float32).reshape(8, 128)
    y = pl.pallas_call(k, out_shape=jax.ShapeDtypeStruct((8, 128), jnp.float32))(x)
    if bool(jnp.array_equal(y, jnp.roll(x, 1, axis=0))):
        return 1
    if bool(jnp.array_equal(y, jnp.roll(x, -1, axis=0))):
        return -1
    raise NotImplementedError("pltpu.roll: unexpected rotation semantics")


# ------------------------------ Pallas kernel --------------------------------

def _spe_kernel(p_ref, w_ref, b_ref, o_ref, *, gh, gw, tm, tn, roll_sign):
    """One (tm, tn) output tile of the fused shifted-patch projection.

    p_ref: (tm, K_base)    base-patch features (compute dtype)
    w_ref: (K_base, 5*tn)  [W_c | W_wm | W_wp | W_hm | W_hp] for this N tile
    b_ref: (1, tn)         f32 bias slice
    o_ref: (tm, tn)        output tile
    """
    # Single wide MXU pass instead of 5 skinny ones.
    y = jnp.dot(p_ref[...], w_ref[...], preferred_element_type=jnp.float32)

    r = lax.broadcasted_iota(jnp.int32, (tm, 1), 0)   # output row within the tile
    wi = r % gw                   # patch column within the spatial grid
    hi = (r // gw) % gh           # patch row within the spatial grid

    def chunk(s):
        return y[:, s * tn:(s + 1) * tn]              # lane-aligned (tn % 128 == 0)

    def from_nbr(s, row_shift):
        # Move neighbour products DOWN by `row_shift` rows (out[i] = prod[i-shift]).
        return pltpu.roll(chunk(s), shift=(roll_sign * row_shift) % tm, axis=0)

    # Register accumulation; masks act on the OUTPUT rows.  tm is a whole
    # number of (gh*gw) slabs, so every wrapped row is masked off.
    acc = chunk(0) + b_ref[...]                                      # centre + bias
    acc = acc + jnp.where(wi > 0,      from_nbr(1, 1),   0.0)        # from left nbr
    acc = acc + jnp.where(wi < gw - 1, from_nbr(2, -1),  0.0)        # from right nbr
    acc = acc + jnp.where(hi > 0,      from_nbr(3, gw),  0.0)        # from upper nbr
    acc = acc + jnp.where(hi < gh - 1, from_nbr(4, -gw), 0.0)        # from lower nbr
    o_ref[...] = acc.astype(o_ref.dtype)                             # one aligned store


# --------------------- weight folding (init-time, tiny) ----------------------

def _shift_zero(a, axis, amount):
    """out[..., i, ...] = a[..., i + amount, ...] where valid, else 0."""
    if amount == 0:
        return a
    n = a.shape[axis]

    def tsl(lo, hi):
        return tuple(slice(lo, hi) if d == axis else slice(None)
                     for d in range(a.ndim))

    out = jnp.zeros_like(a)
    if amount > 0:
        return out.at[tsl(0, n - amount)].set(a[tsl(amount, n)])
    return out.at[tsl(-amount, n)].set(a[tsl(0, n + amount)])


def _fold_shift_weights(w_full, c, p0, p1, p2, half):
    """Fold the cardinal-4 patch shift into 5 base-patch weight matrices.

    w_full rows follow the PyTorch Rearrange order (p0 p1 p2 c5) with
    c5 = (shift, c), shift order [id, left, right, top, bottom].
    Returns (5, c*p0*p1*p2, N) with rows in base order (c, p0, p1, p2):
    [W_c, W_wm, W_wp, W_hm, W_hp]  (centre, applied to left/right/upper/lower
    neighbour patches respectively).
    """
    n = w_full.shape[1]
    w6 = w_full.reshape(p0, p1, p2, 5, c, n)
    w_id, w_l, w_r, w_t, w_b = (w6[:, :, :, s] for s in range(5))
    rest_h, rest_w = p1 - half, p2 - half

    w_c = (w_id
           + _shift_zero(w_l, 2, +half) + _shift_zero(w_r, 2, -half)
           + _shift_zero(w_t, 1, +half) + _shift_zero(w_b, 1, -half))
    w_wm = _shift_zero(w_l, 2, -rest_w)   # applied to patch (hi, wi-1)
    w_wp = _shift_zero(w_r, 2, +rest_w)   # applied to patch (hi, wi+1)
    w_hm = _shift_zero(w_t, 1, -rest_h)   # applied to patch (hi-1, wi)
    w_hp = _shift_zero(w_b, 1, +rest_h)   # applied to patch (hi+1, wi)

    stk = jnp.stack([w_c, w_wm, w_wp, w_hm, w_hp], axis=0)      # (5,p0,p1,p2,c,n)
    return jnp.transpose(stk, (0, 4, 1, 2, 3, 5)).reshape(5, c * p0 * p1 * p2, n)


# -------------------------------- tiling --------------------------------------

def _choose_tiling(num_slabs, rows_per_slab, target_rows):
    """Slabs per M tile: whole (b, t) slabs (neighbour structure never crosses a
    tile), tm % 8 == 0, ~target_rows rows, preferring zero M padding and an even
    number of grid steps (v7x has 2 TensorCores)."""
    align = 8 // math.gcd(rows_per_slab, 8)              # slab-count granularity
    cap = max(align, (target_rows // rows_per_slab) // align * align)
    cap = min(cap, _round_up(num_slabs, align))
    best_spt, best_gm, best_score = None, None, None
    for spt in range(cap, 0, -align):
        gm = pl.cdiv(num_slabs, spt)
        pad = gm * spt - num_slabs
        score = (pad == 0, gm % 2 == 0, spt)             # no pad > even grid > big tile
        if best_score is None or score > best_score:
            best_spt, best_gm, best_score = spt, gm, score
    return best_spt, best_gm


# -------------------------------- forward -------------------------------------

def shifted_patch_embed_3d(x, weight_t, bias, *, patch_size, tubelet_size,
                           compute_dtype=jnp.bfloat16, out_dtype=None,
                           target_rows=1024):
    """ShiftedPatchEmbed3d forward.

    x:        (b, c, T, H, W)  NCTHW video (PyTorch layout)
    weight_t: (patch_dim, embed_dim)  == PyTorch proj.weight.T
    bias:     (embed_dim,)
    returns   (b, num_patches, embed_dim)

    Note: target_rows≈1024 suits v5e/v6e (128 MiB VMEM); prefer ≈512 on v7x
    (64 MiB) for very large K_base / embed_dim.
    """
    b, c, T, H, W = x.shape
    p0, p1, p2 = tubelet_size, patch_size, patch_size
    half = patch_size // 2
    assert T % p0 == 0 and H % p1 == 0 and W % p2 == 0
    t, gh, gw = T // p0, H // p1, W // p2
    k_base = c * p0 * p1 * p2
    patch_dim, n = weight_t.shape
    assert patch_dim == 5 * k_base, (patch_dim, k_base)
    out_dtype = x.dtype if out_dtype is None else out_dtype

    # N tiling: lane-dense (multiple-of-128) tiles; tn divides the padded N.
    n_pad = _round_up(n, 128)
    tn = 128
    for cand in range(min(512, n_pad), 127, -128):
        if n_pad % cand == 0:
            tn = cand
            break
    grid_n = n_pad // tn

    # Base patchify: ONE relayout of 1x data (bf16, so half the bytes); the 5x
    # shifted tensor never exists.  See module-level TODO about moving this DMA
    # into the kernel.
    p_rows = x.astype(compute_dtype).reshape(b, c, t, p0, gh, p1, gw, p2)
    p_rows = jnp.transpose(p_rows, (0, 2, 4, 6, 1, 3, 5, 7))
    p_rows = p_rows.reshape(b * t * gh * gw, k_base)

    # Fold the cardinal-4 shift into 5 permuted weight matrices (tiny, f32) and
    # lay them out N-tile-major so one fused dot covers all 5 directions:
    #   w_cat[:, j*5*tn:(j+1)*5*tn] = [W_c | W_wm | W_wp | W_hm | W_hp] for N tile j.
    w5 = _fold_shift_weights(weight_t.astype(jnp.float32), c, p0, p1, p2, half)
    w5 = jnp.pad(w5, ((0, 0), (0, 0), (0, n_pad - n)))
    w_cat = jnp.transpose(w5.reshape(5, k_base, grid_n, tn), (1, 2, 0, 3))
    w_cat = w_cat.reshape(k_base, grid_n * 5 * tn).astype(compute_dtype)
    bias_p = jnp.pad(bias.astype(jnp.float32), (0, n_pad - n)).reshape(1, n_pad)

    # M tiling: whole (b, t) slabs per tile, zero padding / even grid preferred.
    rows_per_slab = gh * gw
    num_slabs = b * t
    spt, grid_m = _choose_tiling(num_slabs, rows_per_slab, target_rows)
    tm = spt * rows_per_slab
    # The in-kernel masks/rolls assume whole slabs per tile and 8-row alignment.
    assert tm % rows_per_slab == 0 and tm % 8 == 0, (tm, rows_per_slab)
    m = num_slabs * rows_per_slab
    m_pad = grid_m * tm
    if m_pad > m:
        p_rows = jnp.pad(p_rows, ((0, m_pad - m), (0, 0)))

    # Grid-invariant operands don't need a second pipeline buffer.
    w_mode = pl.Buffered(1) if grid_n == 1 else None

    kernel = functools.partial(_spe_kernel, gh=gh, gw=gw, tm=tm, tn=tn,
                               roll_sign=_roll_sign())
    out = pl.pallas_call(
        kernel,
        out_shape=jax.ShapeDtypeStruct((m_pad, n_pad), out_dtype),
        grid_spec=pltpu.PrefetchScalarGridSpec(
            num_scalar_prefetch=0,
            grid=(grid_m, grid_n),
            in_specs=[
                pl.BlockSpec((tm, k_base), lambda i, j: (i, 0)),
                pl.BlockSpec((k_base, 5 * tn), lambda i, j: (0, j),
                             pipeline_mode=w_mode),
                pl.BlockSpec((1, tn), lambda i, j: (0, j),
                             pipeline_mode=w_mode),
            ],
            out_specs=pl.BlockSpec((tm, tn), lambda i, j: (i, j)),
        ),
        # Every (i, j) tile is independent -> megacore-shardable on v7x.
        # VMEM footprint here is << scoped defaults; set vmem_limit_bytes only
        # when K_base * N grows.
        compiler_params=pltpu.CompilerParams(
            dimension_semantics=("parallel", "parallel")),
    )(p_rows, w_cat, bias_p)

    return out[:m, :n].reshape(b, t * gh * gw, n)


# -------------------- naive reference (validation only) -----------------------

def _reference_patchify(x, patch_size, tubelet_size):
    """PyTorch-equivalent (un-fused) patchify: pad, 4 cardinal shifts, concat,
    rearrange.  Used only to validate the fused kernel."""
    b, c, T, H, W = x.shape
    half = patch_size // 2
    x2d = x.reshape(b, c * T, H, W)
    xp = jnp.pad(x2d, ((0, 0), (0, 0), (half, half), (half, half)))
    x_l = xp[:, :, half:half + H, 0:W]
    x_r = xp[:, :, half:half + H, 2 * half:2 * half + W]
    x_t = xp[:, :, 0:H, half:half + W]
    x_b = xp[:, :, 2 * half:2 * half + H, half:half + W]
    cat = jnp.concatenate([x2d, x_l, x_r, x_t, x_b], axis=1)
    c5 = 5 * c
    p0, p1, p2 = tubelet_size, patch_size, patch_size
    t, gh, gw = T // p0, H // p1, W // p2
    x5 = cat.reshape(b, c5, t, p0, gh, p1, gw, p2)
    x5 = jnp.transpose(x5, (0, 2, 4, 6, 3, 5, 7, 1))
    return x5.reshape(b, t * gh * gw, p0 * p1 * p2 * c5)


# ----------------------------------- main --------------------------------------

def _run_case(name, *, in_img_size, in_channels, in_num_frames, embed_dim,
              patch_size, tubelet_size, batch):
    expansion = 5  # cardinal-4 mode
    patch_dim = in_channels * expansion * patch_size ** 2 * tubelet_size
    num_patches = (in_num_frames // tubelet_size) * \
                  (in_img_size[0] // patch_size) * (in_img_size[1] // patch_size)

    kx, kw, kb = jax.random.split(jax.random.PRNGKey(0), 3)
    x = jax.random.normal(
        kx, (batch, in_channels, in_num_frames, in_img_size[0], in_img_size[1]),
        dtype=jnp.float32)
    # PyTorch Linear stores weight as (embed_dim, patch_dim); keep W.T layout.
    weight_t = (jax.random.normal(kw, (patch_dim, embed_dim), dtype=jnp.float32)
                * (1.0 / math.sqrt(patch_dim)))
    bias = jax.random.normal(kb, (embed_dim,), dtype=jnp.float32) * 0.01

    fwd = jax.jit(functools.partial(
        shifted_patch_embed_3d, patch_size=patch_size, tubelet_size=tubelet_size))
    out = jax.block_until_ready(fwd(x, weight_t, bias))
    assert out.shape == (batch, num_patches, embed_dim), (name, out.shape)

    # Ground truth: original (un-fused, full-f32) formulation.  Tolerance covers
    # the bf16 MXU inputs (f32 accumulation) used by the kernel.
    ref = _reference_patchify(x, patch_size, tubelet_size) @ weight_t + bias
    err = float(jnp.max(jnp.abs(out - ref)))
    assert jnp.allclose(out, ref, atol=5e-2, rtol=5e-2), (name, err)


if __name__ == "__main__":
    _roll_sign()  # prime the roll-convention probe outside of any jit trace

    # Even patch size (the common configuration).
    _run_case("even_patch", in_img_size=(16, 16), in_channels=2, in_num_frames=4,
              embed_dim=32, patch_size=4, tubelet_size=2, batch=2)
    # Odd patch size (half != patch_size - half): exercises the asymmetric fold.
    _run_case("odd_patch", in_img_size=(12, 12), in_channels=4, in_num_frames=4,
              embed_dim=32, patch_size=3, tubelet_size=2, batch=2)

    print("KERNEL_OK")
</pallas_src>

<mosaic_0001>
module attributes {stable_mosaic.version = 11 : i64} {
  func.func @k(%arg0: memref<8x128xf32, #tpu.memory_space<vmem>>, %arg1: memref<8x128xf32, #tpu.memory_space<vmem>>) attributes {dimension_semantics = [], scalar_prefetch = 0 : i64, scratch_operands = 0 : i64, tpu.core_type = #tpu.core_type<tc>} {
    %c0 = arith.constant 0 : index
    %c0_0 = arith.constant 0 : index
    %0 = vector.load %arg0[%c0, %c0_0] : memref<8x128xf32, #tpu.memory_space<vmem>>, vector<8x128xf32>
    %c1_i32 = arith.constant 1 : i32
    %1 = tpu.dynamic_rotate %0 by %c1_i32 dim 0 : vector<8x128xf32>, i32 -> vector<8x128xf32>
    %c0_1 = arith.constant 0 : index
    %c0_2 = arith.constant 0 : index
    %2 = vector.load %arg1[%c0_1, %c0_2] : memref<8x128xf32, #tpu.memory_space<vmem>>, vector<8x128xf32>
    tpu.vector_store %arg1[%c0_1, %c0_2], %1 {strides = array<i32>} : memref<8x128xf32, #tpu.memory_space<vmem>>, vector<8x128xf32>,
    return
  }
}

</mosaic_0001>

<bundles_post_ra>
// kernel: tpu_custom_call.1
= control target key start
LH: loop header
LB: loop body
LE: loop exit
PB: predicated region body
PF: predicated region fallthrough
CT: control target
= control target key end

     0   :  { %6 = vsyncpa [#allocation3], 0  ;;  %s125_s0 = inlined_call_operand.hbm [shape: f32[8,128], index: 0, kind: input, shape index: {}]   ;;  %s126_s1 = inlined_call_operand.hbm [shape: f32[8,128], index: 1, kind: output, shape index: {}]  }
   0x1   :  { %7 = vsyncpa [#allocation4], 0  ;;  %s89_s6 = smov [#allocation2]   ;;  %s41_s10 = scalar_lea.hbm %s125_s0, 128 }
   0x2   :  { %s14_s7 = sshll.u32 %s89_s6, 4  ;;  %p42_p0 = scmp.ne.s32.totalorder %s125_s0, %s41_s10  ;;  %s15_s7 = int_to_ptr.vmem [resolvable:$true] %s14_s7 }
   0x3   :  { %p45_p1 = scmp.lt.u32.totalorder %s41_s10, %s125_s0 }
   0x5   :  { %p47_p2 = pnand %p45_p1, %p42_p0 }
   0x7   :  { %50 = shalt.err (!%p47_p2)
}
   0x8   :  { %s51_s15 = scalar_lea.vmem %s15_s7, 128  ;;  %p56_p4 = scmp.lt.s32.totalorder %s15_s7, %s15_s7 }
   0x9   :  { %p52_p3 = scmp.ne.s32.totalorder %s15_s7, %s51_s15  ;;  %p57_p5 = scmp.lt.s32.totalorder %s51_s15, %s51_s15 }
   0xb   :  { %p58_p6 = por %p57_p5, %p56_p4 }
   0xd   :  { %p59_p7 = pnand %p58_p6, %p52_p3 }
   0xf   :  { %62 = shalt.err (!%p59_p7)
}
  0x10   :  { %17 = dma.hbm_to_vmem [thread:$0]  %s125_s0, 128, %s15_s7, [#allocation3]  }
  0x11   :  { %85 = dma.done.wait [#allocation3], 128  }
  0x12   :  { %86 = vsyncadd [#allocation3], 4294967168  ;;  %s90_s18 = smov [#allocation5]   ;;  %v21_v0 = vld [vmem:[#allocation2] sm:$0xff] }
  0x13   :  { %s30_s19 = sshll.u32 %s90_s18, 4  ;;  %v22_v1 = vrot.slane %v21_v0, 7  ;;  %s31_s19 = int_to_ptr.vmem [resolvable:$true] %s30_s19 }
  0x14   :  { %s63_s20 = scalar_lea.vmem %s31_s19, 128  ;;  %p68_p9 = scmp.lt.s32.totalorder %s31_s19, %s31_s19 }
  0x15   :  { %23 = vst [vmem:[#allocation5] sm:$0xff] %v22_v1  ;;  %p64_p8 = scmp.ne.s32.totalorder %s31_s19, %s63_s20  ;;  %p69_p10 = scmp.lt.s32.totalorder %s63_s20, %s63_s20 }
  0x17   :  { %p70_p11 = por %p69_p10, %p68_p9 }
  0x19   :  { %p71_p12 = pnand %p70_p11, %p64_p8 }
  0x1b   :  { %74 = shalt.err (!%p71_p12)
}
  0x1c   :  { %s75_s23 = scalar_lea.hbm %s126_s1, 128 }
  0x1d   :  { %p76_p13 = scmp.ne.s32.totalorder %s126_s1, %s75_s23  ;;  %p79_p0 = scmp.lt.u32.totalorder %s75_s23, %s126_s1 }
  0x1f   :  { %p81_p1 = pnand %p79_p0, %p76_p13 }
  0x21   :  { %84 = shalt.err (!%p81_p1)
}
  0x22   :  { %33 = dma.vmem_to_hbm [thread:$0]  %s31_s19, 128, %s126_s1, [#allocation4]  }
  0x23   :  { %87 = dma.done.wait [#allocation4], 128  }
  0x24   :  { %88 = vsyncadd [#allocation4], 4294967168 }
  0x25   :  { %37 = vsyncpa [#allocation3], 1 }
  0x26   :  { %38 = vsyncpa [#allocation4], 1 }

</bundles_post_ra>
